<compile_context>
chip_gen: v7x
topology: tpu7x:2x2x1
jax: 0.10.0
libtpu: 0.0.40
codegen_flags: <defaults>
</compile_context>

<pallas_src>
import functools

import jax
import jax.numpy as jnp
from jax.experimental import pallas as pl
from jax.experimental.pallas import tpu as pltpu

GN_EPS = 1e-5


def _sa_kernel(coef_ref, x_ref, o_ref, *, hw):
    # coef_ref : (3, 2, CHblk, 1)   fused per-channel (A, B, C) coefficients
    # x_ref    : (TBb, 2, CHblk, HW) input block (pre-shuffle channel order)
    # o_ref    : (TBb, CHblk, 2*HW) output block (shuffled memory order)
    coef = coef_ref[...].astype(jnp.float32)          # (3, 2, CHblk, 1)
    inv_hw = 1.0 / float(hw)

    # Process the two pre-shuffle halves separately (halves peak f32 temps).
    # Branch selection (channel-attn vs GroupNorm gate) is encoded purely in
    # the per-channel coefficients, so the math is uniform:
    #   gate = sigmoid(A*rsqrt(var+eps)*(x-mean) + B*mean + C)
    #   channel branch : A=0,  B=cweight, C=cbias
    #   spatial branch : A=sw*gn_w, B=0, C=sw*gn_b+sb
    for p in (0, 1):
        x = x_ref[:, p].astype(jnp.float32)            # (TBb, CHblk, HW)
        a = coef[0, p][None]                           # (1, CHblk, 1)
        b = coef[1, p][None]
        c = coef[2, p][None]

        mean = jnp.sum(x, axis=-1, keepdims=True) * inv_hw
        d = x - mean                                   # two-pass variance
        var = jnp.sum(d * d, axis=-1, keepdims=True) * inv_hw
        inv = jax.lax.rsqrt(var + GN_EPS)              # EUP; A=0 masks it for
                                                       # the channel branch
        arg = (a * inv) * d + (b * mean + c)
        res = (x * jax.nn.sigmoid(arg)).astype(o_ref.dtype)

        # channel_shuffle(groups=2): pre-channel (p, q) -> shuffled 2q+p,
        # realised as a lane-dense half-block store at lane offset p*HW.
        o_ref[:, :, p * hw:(p + 1) * hw] = res


def _device_vmem_capacity_bytes():
    """Per-core VMEM capacity; conservative 64 MiB (v7x) fallback."""
    try:
        info = pltpu.get_tpu_info()
        cap = getattr(info, "vmem_capacity_bytes", None)
        if cap:
            return int(cap)
    except Exception:
        pass
    return 64 << 20


def _pick_tbb(batch, per_sample_bytes, target_bytes):
    """Batch elements per block: ~target_bytes per block, grid >= 2 if possible."""
    tbb = max(1, min(batch, target_bytes // max(per_sample_bytes, 1)))
    if batch >= 2:
        tbb = min(tbb, max(1, batch // 2))   # keep >=2 grid steps (megacore)
    while batch % tbb:
        tbb -= 1
    return int(tbb)


def _pick_channel_split(half, n_batch_blocks):
    """Second 'parallel' grid axis so v7x's 2 TCs get even, balanced work."""
    if n_batch_blocks >= 2 and n_batch_blocks % 2 == 0:
        return 1
    if half % 2 == 0 and (half // 2) % 8 == 0:   # keep 8-aligned sublanes
        return 2
    return 1


def sa_layer_forward(x, cweight, cbias, sweight, sbias, gn_weight, gn_bias,
                     groups=6, out_dtype=None):
    """x: (B, C, H, W); per-channel params of shape (C // (2*groups),)."""
    b, c, h, w = x.shape
    assert c % (2 * groups) == 0
    cg = c // (2 * groups)
    half = c // 2
    hw = h * w
    out_dtype = x.dtype if out_dtype is None else jnp.dtype(out_dtype)

    f32 = jnp.float32
    cw = cweight.astype(f32)
    cb = cbias.astype(f32)
    sw = sweight.astype(f32)
    sb = sbias.astype(f32)
    gw = gn_weight.astype(f32)
    gb = gn_bias.astype(f32)

    # Per-channel fused coefficients (period 2*cg over pre-shuffle channels),
    # merged into one (3, 2, C//2, 1) resident table.
    zeros = jnp.zeros((cg,), f32)
    a_grp = jnp.concatenate([zeros, sw * gw])          # (2*cg,)
    b_grp = jnp.concatenate([cw, zeros])
    c_grp = jnp.concatenate([cb, sw * gb + sb])
    coef = jnp.stack([jnp.tile(a_grp, groups),
                      jnp.tile(b_grp, groups),
                      jnp.tile(c_grp, groups)]).reshape(3, 2, half, 1)

    # Free, contiguous view: split channels into (p, q) halves for the shuffle.
    x4 = x.reshape(b, 2, half, hw)

    # Generation-aware block sizing + explicit VMEM limit.
    io_itemsize = jnp.dtype(x.dtype).itemsize
    out_itemsize = jnp.dtype(out_dtype).itemsize
    cap = _device_vmem_capacity_bytes()
    target_bytes = min(max(cap // 16, 1 << 20), 8 << 20)

    per_sample_in = c * hw * io_itemsize
    tbb = _pick_tbb(b, per_sample_in, target_bytes)
    n_batch_blocks = b // tbb
    n_ch_blocks = _pick_channel_split(half, n_batch_blocks)
    ch_blk = half // n_ch_blocks

    in_blk = tbb * 2 * ch_blk * hw * io_itemsize
    out_blk = tbb * 2 * ch_blk * hw * out_itemsize
    temps = 4 * tbb * ch_blk * hw * 4                 # live f32 temps per half
    need = 2 * (in_blk + out_blk) + temps + (1 << 20)
    vmem_limit = max(need, min(32 << 20, cap // 2))
    vmem_limit = min(vmem_limit, max(need, cap - (8 << 20)))

    grid = (n_batch_blocks, n_ch_blocks)

    out3 = pl.pallas_call(
        functools.partial(_sa_kernel, hw=hw),
        out_shape=jax.ShapeDtypeStruct((b, half, 2 * hw), out_dtype),
        grid_spec=pltpu.PrefetchScalarGridSpec(
            num_scalar_prefetch=0,
            grid=grid,
            in_specs=[
                pl.BlockSpec((3, 2, ch_blk, 1), lambda i, cb_: (0, 0, cb_, 0)),
                pl.BlockSpec((tbb, 2, ch_blk, hw), lambda i, cb_: (i, 0, cb_, 0)),
            ],
            out_specs=pl.BlockSpec((tbb, ch_blk, 2 * hw),
                                   lambda i, cb_: (i, cb_, 0)),
        ),
        compiler_params=pltpu.CompilerParams(
            dimension_semantics=("parallel", "parallel"),
            vmem_limit_bytes=int(vmem_limit)),
    )(coef, x4)

    # (B, C//2, 2*HW) memory order == shuffled (B, C, H, W): reshape is free.
    return out3.reshape(b, c, h, w)


def sa_layer_ref(x, cweight, cbias, sweight, sbias, gn_weight, gn_bias,
                 groups=6):
    """Pure-JAX reference matching the PyTorch forward exactly."""
    b, c, h, w = x.shape
    cg = c // (2 * groups)
    cw = cweight[None, :, None, None]
    cb = cbias[None, :, None, None]
    sw = sweight[None, :, None, None]
    sb = sbias[None, :, None, None]
    gw = gn_weight[None, :, None, None]
    gb = gn_bias[None, :, None, None]

    xr = x.reshape(b * groups, 2 * cg, h, w)
    x0, x1 = xr[:, :cg], xr[:, cg:]

    xn_mean = jnp.mean(x0, axis=(2, 3), keepdims=True)
    xn = x0 * jax.nn.sigmoid(cw * xn_mean + cb)

    mu = jnp.mean(x1, axis=(2, 3), keepdims=True)
    var = jnp.mean((x1 - mu) ** 2, axis=(2, 3), keepdims=True)
    xhat = (x1 - mu) / jnp.sqrt(var + GN_EPS) * gw + gb
    xs = x1 * jax.nn.sigmoid(sw * xhat + sb)

    out = jnp.concatenate([xn, xs], axis=1).reshape(b, c, h, w)
    out = out.reshape(b, 2, c // 2, h, w).transpose(0, 2, 1, 3, 4)
    return out.reshape(b, c, h, w)


def _rand_params(key, cg):
    k1, k2, k3, k4, k5, k6 = jax.random.split(key, 6)
    f32 = jnp.float32
    return (0.5 * jax.random.normal(k1, (cg,), f32),
            1.0 + 0.5 * jax.random.normal(k2, (cg,), f32),
            0.5 * jax.random.normal(k3, (cg,), f32),
            1.0 + 0.5 * jax.random.normal(k4, (cg,), f32),
            1.0 + 0.5 * jax.random.normal(k5, (cg,), f32),
            0.5 * jax.random.normal(k6, (cg,), f32))


if __name__ == "__main__":
    groups = 6

    # --- Main correctness check: f32 I/O, small shape --------------------
    b, n_feats, h, w = 2, 24, 16, 16           # n_feats divisible by 2*groups
    cg = n_feats // (2 * groups)
    key = jax.random.PRNGKey(0)
    kx, kp, kx2, kp2 = jax.random.split(key, 4)
    x = jax.random.normal(kx, (b, n_feats, h, w), dtype=jnp.float32)
    params = _rand_params(kp, cg)

    out = sa_layer_forward(x, *params, groups=groups)
    out = jax.block_until_ready(out)
    ref = sa_layer_ref(x, *params, groups=groups)
    assert out.shape == (b, n_feats, h, w)
    err = float(jnp.max(jnp.abs(out - ref)))
    assert jnp.allclose(out, ref, rtol=1e-4, atol=1e-4), err

    # --- bf16 HBM I/O path (f32 stats/gating inside the kernel) ----------
    xb = x.astype(jnp.bfloat16)
    out_b = jax.block_until_ready(sa_layer_forward(xb, *params, groups=groups))
    assert out_b.dtype == jnp.bfloat16
    ref_b = sa_layer_ref(xb.astype(jnp.float32), *params, groups=groups)
    err_b = float(jnp.max(jnp.abs(out_b.astype(jnp.float32) - ref_b)))
    assert jnp.allclose(out_b.astype(jnp.float32), ref_b,
                        rtol=3e-2, atol=3e-2), err_b

    # --- Channel-split (megacore-balance) path: batch=1 forces grid (1,2) -
    b2, nf2 = 1, 192
    cg2 = nf2 // (2 * groups)
    x2 = jax.random.normal(kx2, (b2, nf2, h, w), dtype=jnp.float32)
    params2 = _rand_params(kp2, cg2)
    out2 = jax.block_until_ready(sa_layer_forward(x2, *params2, groups=groups))
    ref2 = sa_layer_ref(x2, *params2, groups=groups)
    err2 = float(jnp.max(jnp.abs(out2 - ref2)))
    assert jnp.allclose(out2, ref2, rtol=1e-4, atol=1e-4), err2

    print("KERNEL_OK")
</pallas_src>

<mosaic_0001>
module attributes {stable_mosaic.version = 11 : i64} {
  func.func @_sa_kernel(%arg0: i32, %arg1: i32, %arg2: memref<3x2x12x1xf32, #tpu.memory_space<vmem>>, %arg3: memref<1x2x12x256xf32, #tpu.memory_space<vmem>>, %arg4: memref<1x12x512xf32, #tpu.memory_space<vmem>>) attributes {dimension_semantics = [#tpu.dimension_semantics<parallel>, #tpu.dimension_semantics<parallel>], iteration_bounds = array<i64: 2, 1>, scalar_prefetch = 0 : i64, scratch_operands = 0 : i64, tpu.core_type = #tpu.core_type<tc>, window_params = [{transform_indices = @transform_0, window_bounds = array<i64: 3, 2, 12, 1>}, {transform_indices = @transform_1, window_bounds = array<i64: 1, 2, 12, 256>}, {transform_indices = @transform_2, window_bounds = array<i64: 1, 12, 512>}]} {
    %c0 = arith.constant 0 : index
    %c0_0 = arith.constant 0 : index
    %c0_1 = arith.constant 0 : index
    %c0_2 = arith.constant 0 : index
    %0 = vector.load %arg2[%c0, %c0_0, %c0_1, %c0_2] : memref<3x2x12x1xf32, #tpu.memory_space<vmem>>, vector<3x2x12x1xf32>
    %c0_3 = arith.constant 0 : index
    %c0_4 = arith.constant 0 : index
    %c0_5 = arith.constant 0 : index
    %c0_6 = arith.constant 0 : index
    %1 = vector.load %arg3[%c0_3, %c0_4, %c0_5, %c0_6] : memref<1x2x12x256xf32, #tpu.memory_space<vmem>>, vector<1x1x12x256xf32>
    %2 = vector.shape_cast %1 : vector<1x1x12x256xf32> to vector<1x12x256xf32>
    %3 = vector.extract_strided_slice %0 {offsets = [0, 0, 0, 0], sizes = [1, 1, 12, 1], strides = [1, 1, 1, 1]} : vector<3x2x12x1xf32> to vector<1x1x12x1xf32>
    %4 = vector.shape_cast %3 : vector<1x1x12x1xf32> to vector<12x1xf32>
    %5 = vector.shape_cast %4 : vector<12x1xf32> to vector<1x12x1xf32>
    %6 = vector.extract_strided_slice %0 {offsets = [1, 0, 0, 0], sizes = [1, 1, 12, 1], strides = [1, 1, 1, 1]} : vector<3x2x12x1xf32> to vector<1x1x12x1xf32>
    %7 = vector.shape_cast %6 : vector<1x1x12x1xf32> to vector<12x1xf32>
    %8 = vector.shape_cast %7 : vector<12x1xf32> to vector<1x12x1xf32>
    %9 = vector.extract_strided_slice %0 {offsets = [2, 0, 0, 0], sizes = [1, 1, 12, 1], strides = [1, 1, 1, 1]} : vector<3x2x12x1xf32> to vector<1x1x12x1xf32>
    %10 = vector.shape_cast %9 : vector<1x1x12x1xf32> to vector<12x1xf32>
    %11 = vector.shape_cast %10 : vector<12x1xf32> to vector<1x12x1xf32>
    %cst = arith.constant dense<0.000000e+00> : vector<1x12xf32>
    %12 = vector.multi_reduction <add>, %2, %cst [2] : vector<1x12x256xf32> to vector<1x12xf32>
    %13 = vector.shape_cast %12 : vector<1x12xf32> to vector<1x12x1xf32>
    %cst_7 = arith.constant 3.906250e-03 : f32
    %14 = vector.broadcast %cst_7 : f32 to vector<1x12x1xf32>
    %15 = arith.mulf %13, %14 : vector<1x12x1xf32>
    %16 = vector.broadcast %15 : vector<1x12x1xf32> to vector<1x12x256xf32>
    %17 = arith.subf %2, %16 : vector<1x12x256xf32>
    %18 = arith.mulf %17, %17 : vector<1x12x256xf32>
    %cst_8 = arith.constant dense<0.000000e+00> : vector<1x12xf32>
    %19 = vector.multi_reduction <add>, %18, %cst_8 [2] : vector<1x12x256xf32> to vector<1x12xf32>
    %20 = vector.shape_cast %19 : vector<1x12xf32> to vector<1x12x1xf32>
    %cst_9 = arith.constant 3.906250e-03 : f32
    %21 = vector.broadcast %cst_9 : f32 to vector<1x12x1xf32>
    %22 = arith.mulf %20, %21 : vector<1x12x1xf32>
    %cst_10 = arith.constant 9.99999974E-6 : f32
    %23 = vector.broadcast %cst_10 : f32 to vector<1x12x1xf32>
    %24 = arith.addf %22, %23 : vector<1x12x1xf32>
    %25 = math.rsqrt %24 : vector<1x12x1xf32>
    %26 = arith.mulf %5, %25 : vector<1x12x1xf32>
    %27 = vector.broadcast %26 : vector<1x12x1xf32> to vector<1x12x256xf32>
    %28 = arith.mulf %27, %17 : vector<1x12x256xf32>
    %29 = arith.mulf %8, %15 : vector<1x12x1xf32>
    %30 = arith.addf %29, %11 : vector<1x12x1xf32>
    %31 = vector.broadcast %30 : vector<1x12x1xf32> to vector<1x12x256xf32>
    %32 = arith.addf %28, %31 : vector<1x12x256xf32>
    %33 = arith.negf %32 : vector<1x12x256xf32>
    %34 = math.exp %33 : vector<1x12x256xf32>
    %cst_11 = arith.constant 1.000000e+00 : f32
    %35 = vector.broadcast %cst_11 : f32 to vector<1x12x256xf32>
    %36 = arith.addf %35, %34 : vector<1x12x256xf32>
    %37 = arith.divf %35, %36 : vector<1x12x256xf32>
    %38 = arith.mulf %2, %37 : vector<1x12x256xf32>
    %c0_12 = arith.constant 0 : index
    %c0_13 = arith.constant 0 : index
    %c0_14 = arith.constant 0 : index
    %39 = vector.load %arg4[%c0_12, %c0_13, %c0_14] : memref<1x12x512xf32, #tpu.memory_space<vmem>>, vector<1x12x256xf32>
    tpu.vector_store %arg4[%c0_12, %c0_13, %c0_14], %38 {strides = array<i32>} : memref<1x12x512xf32, #tpu.memory_space<vmem>>, vector<1x12x256xf32>,
    %c0_15 = arith.constant 0 : index
    %c1 = arith.constant 1 : index
    %c0_16 = arith.constant 0 : index
    %c0_17 = arith.constant 0 : index
    %40 = vector.load %arg3[%c0_15, %c1, %c0_16, %c0_17] : memref<1x2x12x256xf32, #tpu.memory_space<vmem>>, vector<1x1x12x256xf32>
    %41 = vector.shape_cast %40 : vector<1x1x12x256xf32> to vector<1x12x256xf32>
    %42 = vector.extract_strided_slice %0 {offsets = [0, 1, 0, 0], sizes = [1, 1, 12, 1], strides = [1, 1, 1, 1]} : vector<3x2x12x1xf32> to vector<1x1x12x1xf32>
    %43 = vector.shape_cast %42 : vector<1x1x12x1xf32> to vector<12x1xf32>
    %44 = vector.shape_cast %43 : vector<12x1xf32> to vector<1x12x1xf32>
    %45 = vector.extract_strided_slice %0 {offsets = [1, 1, 0, 0], sizes = [1, 1, 12, 1], strides = [1, 1, 1, 1]} : vector<3x2x12x1xf32> to vector<1x1x12x1xf32>
    %46 = vector.shape_cast %45 : vector<1x1x12x1xf32> to vector<12x1xf32>
    %47 = vector.shape_cast %46 : vector<12x1xf32> to vector<1x12x1xf32>
    %48 = vector.extract_strided_slice %0 {offsets = [2, 1, 0, 0], sizes = [1, 1, 12, 1], strides = [1, 1, 1, 1]} : vector<3x2x12x1xf32> to vector<1x1x12x1xf32>
    %49 = vector.shape_cast %48 : vector<1x1x12x1xf32> to vector<12x1xf32>
    %50 = vector.shape_cast %49 : vector<12x1xf32> to vector<1x12x1xf32>
    %cst_18 = arith.constant dense<0.000000e+00> : vector<1x12xf32>
    %51 = vector.multi_reduction <add>, %41, %cst_18 [2] : vector<1x12x256xf32> to vector<1x12xf32>
    %52 = vector.shape_cast %51 : vector<1x12xf32> to vector<1x12x1xf32>
    %cst_19 = arith.constant 3.906250e-03 : f32
    %53 = vector.broadcast %cst_19 : f32 to vector<1x12x1xf32>
    %54 = arith.mulf %52, %53 : vector<1x12x1xf32>
    %55 = vector.broadcast %54 : vector<1x12x1xf32> to vector<1x12x256xf32>
    %56 = arith.subf %41, %55 : vector<1x12x256xf32>
    %57 = arith.mulf %56, %56 : vector<1x12x256xf32>
    %cst_20 = arith.constant dense<0.000000e+00> : vector<1x12xf32>
    %58 = vector.multi_reduction <add>, %57, %cst_20 [2] : vector<1x12x256xf32> to vector<1x12xf32>
    %59 = vector.shape_cast %58 : vector<1x12xf32> to vector<1x12x1xf32>
    %cst_21 = arith.constant 3.906250e-03 : f32
    %60 = vector.broadcast %cst_21 : f32 to vector<1x12x1xf32>
    %61 = arith.mulf %59, %60 : vector<1x12x1xf32>
    %cst_22 = arith.constant 9.99999974E-6 : f32
    %62 = vector.broadcast %cst_22 : f32 to vector<1x12x1xf32>
    %63 = arith.addf %61, %62 : vector<1x12x1xf32>
    %64 = math.rsqrt %63 : vector<1x12x1xf32>
    %65 = arith.mulf %44, %64 : vector<1x12x1xf32>
    %66 = vector.broadcast %65 : vector<1x12x1xf32> to vector<1x12x256xf32>
    %67 = arith.mulf %66, %56 : vector<1x12x256xf32>
    %68 = arith.mulf %47, %54 : vector<1x12x1xf32>
    %69 = arith.addf %68, %50 : vector<1x12x1xf32>
    %70 = vector.broadcast %69 : vector<1x12x1xf32> to vector<1x12x256xf32>
    %71 = arith.addf %67, %70 : vector<1x12x256xf32>
    %72 = arith.negf %71 : vector<1x12x256xf32>
    %73 = math.exp %72 : vector<1x12x256xf32>
    %cst_23 = arith.constant 1.000000e+00 : f32
    %74 = vector.broadcast %cst_23 : f32 to vector<1x12x256xf32>
    %75 = arith.addf %74, %73 : vector<1x12x256xf32>
    %76 = arith.divf %74, %75 : vector<1x12x256xf32>
    %77 = arith.mulf %41, %76 : vector<1x12x256xf32>
    %c0_24 = arith.constant 0 : index
    %c0_25 = arith.constant 0 : index
    %c256 = arith.constant 256 : index
    %78 = vector.load %arg4[%c0_24, %c0_25, %c256] : memref<1x12x512xf32, #tpu.memory_space<vmem>>, vector<1x12x256xf32>
    tpu.vector_store %arg4[%c0_24, %c0_25, %c256], %77 {strides = array<i32>} : memref<1x12x512xf32, #tpu.memory_space<vmem>>, vector<1x12x256xf32>,
    return
  }
  func.func @transform_0(%arg0: i32, %arg1: i32) -> (i32, i32, i32, i32) {
    %c0_i32 = arith.constant 0 : i32
    %c0_i32_0 = arith.constant 0 : i32
    %c0_i32_1 = arith.constant 0 : i32
    %c0_i32_2 = arith.constant 0 : i32
    return %c0_i32, %c0_i32_0, %arg1, %c0_i32_1 : i32, i32, i32, i32
  }
  func.func @transform_1(%arg0: i32, %arg1: i32) -> (i32, i32, i32, i32) {
    %c0_i32 = arith.constant 0 : i32
    %c0_i32_0 = arith.constant 0 : i32
    %c0_i32_1 = arith.constant 0 : i32
    return %arg0, %c0_i32, %arg1, %c0_i32_0 : i32, i32, i32, i32
  }
  func.func @transform_2(%arg0: i32, %arg1: i32) -> (i32, i32, i32) {
    %c0_i32 = arith.constant 0 : i32
    %c0_i32_0 = arith.constant 0 : i32
    return %arg0, %arg1, %c0_i32 : i32, i32, i32
  }
}

</mosaic_0001>

<bundles_post_ra>
// kernel: tpu_custom_call.1
= control target key start
LH: loop header
LB: loop body
LE: loop exit
PB: predicated region body
PF: predicated region fallthrough
CT: control target
= control target key end

     0   :  { %s672_s9 = smov 0   ;;  %s674_s10 = smov 0   ;;  %s841_s0 = inlined_call_operand.vmem [shape: f32[3,2,12,1], index: 0, kind: input, shape index: {}]   ;;  %s842_s1 = inlined_call_operand.vmem [shape: f32[2,2,12,256], index: 1, kind: input, shape index: {}]   ;;  %s843_s2 = inlined_call_operand.vmem [shape: f32[2,12,512], index: 2, kind: output, shape index: {}]  }
   0x1   :  { %s676_s11 = smov 0  }
   0x2 LB: > { %s24_s12 = sadd.s32 1, %s650_s10  ;;  %p544_p0 = scmp.ge.s32.totalorder %s654_s11, 1  ;;  %s654_s11 = sphi %s676_s11, %s12_s11   ;;  %s650_s10 = sphi %s674_s10, %s845_s10   ;;  %s646_s9 = sphi %s672_s9, %s844_s9  }
   0x3   : > { %p26_p1 = scmp.ge.s32.totalorder %s24_s12, 2  ;;  %p145_p2 = scmp.lt.s32.totalorder %s654_s11, 3 }
   0x5   : > { %s847_s12 = smov (%p26_p1, %s24_s12), 0  ;;  %p146_p3 = pnand %p544_p0, %p145_p2 }
   0x6   : > { %p189_p4 = scmp.lt.s32.totalorder (!%p146_p3), %s646_s9, 1  ;;  %vm229_vm0 = vcmask (!%p146_p3), 1043456   ;;  %v656_v16 = vmov (!%p146_p3), 0   ;;  %v214_v49 = vld [vmem:[%s841_s0 + $0x20] sm:$0xff] (!%p146_p3)  ;;  %v215_v51 = vld [vmem:[%s841_s0 + $0x28] sm:$0xf] (!%p146_p3) }
   0x7   : > { %149 = sbr.rel (%p146_p3) target bundleno = 507 (0x1fb), region = 28  ;;  %591 = vset.pattern.permute.xlu1 (!%p146_p3), %v656_v16  ;;  %590 = vset.pattern.permute.xlu0 (!%p146_p3), %v656_v16  ;;  %v218_v52 = vld [vmem:[%s841_s0 + $0x40] sm:$0xff] (!%p146_p3)  ;;  %v216_v55 = vld [vmem:[%s841_s0 + $0x30] sm:$0xff] (!%p146_p3)  ;;  %v219_v56 = vld [vmem:[%s841_s0 + $0x48] sm:$0xf] (!%p146_p3) }
   0x8   : > { %v220_v59 = vld [vmem:[%s841_s0 + $0x50] sm:$0xff] (!%p146_p3) }
   0xe   : > { %s849_s9 = smov (!%p189_p4, %s646_s9), 1 }
   0xf   : > { %s563_s13 = sshll.u32 %s849_s9, 6 }
  0x10   : > { %s197_s16 = scalar_lea.vmem %s842_s1, %s563_s13  ;;  %s208_s20 = scalar_lea.vmem %s843_s2, %s563_s13 }
  0x11   : > { %v698_v0 = vld [vmem:[%s197_s16] sm:$0xff]  ;;  %v700_v1 = vld [vmem:[%s197_s16 + $0x8] sm:$0xff]  ;;  %v702_v2 = vld [vmem:[%s197_s16 + $0x10] sm:$0xf] }
  0x12   : > { %v226_v3 = vadd.f32 %v700_v1, %v698_v0  ;;  %v706_v4 = vld [vmem:[%s197_s16 + $0x18] sm:$0xf]  ;;  %v230_v5 = vsel %vm229_vm0, %v702_v2, 0.0  ;;  %v710_v6 = vld [vmem:[%s197_s16 + $0x20] sm:$0xff]  ;;  %v712_v7 = vld [vmem:[%s197_s16 + $0x28] sm:$0xff] }
  0x13   : > { %v231_v8 = vsel %vm229_vm0, %v706_v4, 0.0  ;;  %v716_v9 = vld [vmem:[%s197_s16 + $0x30] sm:$0xf]  ;;  %v718_v10 = vld [vmem:[%s197_s16 + $0x38] sm:$0xf]  ;;  %v330_v12 = vadd.f32 %v712_v7, %v710_v6 }
  0x14   : > { %227 = vadd.xlane.f32.xlu1 %v226_v3  ;;  %v232_v11 = vadd.f32 %v231_v8, %v230_v5  ;;  %v333_v13 = vsel %vm229_vm0, %v716_v9, 0.0  ;;  %v334_v14 = vsel %vm229_vm0, %v718_v10, 0.0 }
  0x15   : > { %v335_v15 = vadd.f32 %v334_v14, %v333_v13 }
  0x16   : > { %233 = vadd.xlane.f32.xlu0 %v232_v11 }
  0x18   : > { %331 = vadd.xlane.f32.xlu1 %v330_v12 }
  0x1a   : > { %336 = vadd.xlane.f32.xlu0 %v335_v15 }
  0xa1   : > { %v228_v17 = vpop.xlane.xlu1 %227 }
  0xa2   : > { %v235_v18 = vmul.f32 0.00390625, %v228_v17  ;;  %v210_v17 = vld [vmem:[%s841_s0] sm:$0xff] }
  0xa3   : > { %v234_v19 = vpop.xlane.xlu0 %233 }
  0xa4   : > { %v727_v20 = vsub.f32 %v698_v0, %v235_v18  ;;  %v730_v21 = vsub.f32 %v700_v1, %v235_v18  ;;  %v236_v22 = vmul.f32 0.00390625, %v234_v19  ;;  %v275_v50 = vmul.f32 %v235_v18, %v214_v49 }
  0xa5   : > { %v332_v23 = vpop.xlane.xlu1 %331 }
  0xa6   : > { %v733_v24 = vsub.f32 %v702_v2, %v236_v22  ;;  %v736_v25 = vsub.f32 %v706_v4, %v236_v22  ;;  %v338_v26 = vmul.f32 0.00390625, %v332_v23  ;;  %v241_v28 = vmul.f32 %v727_v20, %v727_v20 }
  0xa7   : > { %v337_v27 = vpop.xlane.xlu0 %336  ;;  %v242_v29 = vmul.f32 %v730_v21, %v730_v21  ;;  %v276_v53 = vmul.f32 %v236_v22, %v215_v51  ;;  %v277_v54 = vadd.f32 %v275_v50, %v218_v52  ;;  %v212_v22 = vld [vmem:[%s841_s0 + $0x10] sm:$0xff] }
  0xa8   : > { %v743_v30 = vsub.f32 %v710_v6, %v338_v26  ;;  %v746_v31 = vsub.f32 %v712_v7, %v338_v26  ;;  %v748_v32 = vmul.f32 0.00390625, %v337_v27  ;;  %v243_v34 = vmul.f32 %v733_v24, %v733_v24  ;;  %v211_v27 = vld [vmem:[%s841_s0 + $0x8] sm:$0xf] }
  0xa9   : > { %v245_v33 = vadd.f32 %v242_v29, %v241_v28  ;;  %v244_v35 = vmul.f32 %v736_v25, %v736_v25  ;;  %v378_v57 = vmul.f32 %v338_v26, %v216_v55  ;;  %v278_v58 = vadd.f32 %v276_v53, %v219_v56 }
  0xaa   : > { %v756_v36 = vsub.f32 %v716_v9, %v748_v32  ;;  %v760_v37 = vsub.f32 %v718_v10, %v748_v32  ;;  %v344_v38 = vmul.f32 %v743_v30, %v743_v30  ;;  %v248_v39 = vsel %vm229_vm0, %v243_v34, 0.0  ;;  %v213_v34 = vld [vmem:[%s841_s0 + $0x18] sm:$0xf] }
  0xab   : > { %246 = vadd.xlane.f32.xlu0 %v245_v33  ;;  %v249_v40 = vsel %vm229_vm0, %v244_v35, 0.0  ;;  %v345_v41 = vmul.f32 %v746_v31, %v746_v31  ;;  %v380_v60 = vadd.f32 %v378_v57, %v220_v59  ;;  %v217_v35 = vld [vmem:[%s841_s0 + $0x38] sm:$0xf] }
  0xac   : > { %v250_v42 = vadd.f32 %v249_v40, %v248_v39  ;;  %v346_v43 = vmul.f32 %v756_v36, %v756_v36  ;;  %v347_v44 = vmul.f32 %v760_v37, %v760_v37  ;;  %v379_v39 = vmul.f32 %v748_v32, %v217_v35  ;;  %v221_v40 = vld [vmem:[%s841_s0 + $0x58] sm:$0xf] }
  0xad   : > { %v348_v45 = vadd.f32 %v345_v41, %v344_v38 }
  0xae   : > { %251 = vadd.xlane.f32.xlu1 %v250_v42  ;;  %v351_v46 = vsel %vm229_vm0, %v346_v43, 0.0  ;;  %v352_v47 = vsel %vm229_vm0, %v347_v44, 0.0  ;;  %v381_v41 = vadd.f32 %v379_v39, %v221_v40 }
  0xaf   : > { %349 = vadd.xlane.f32.xlu0 %v348_v45  ;;  %v353_v48 = vadd.f32 %v352_v47, %v351_v46 }
  0xb2   : > { %354 = vadd.xlane.f32.xlu1 %v353_v48 }
  0xc3   : > { %281 = vperm.xlu1 %591, %v277_v54  }
  0xc7   : > { %286 = vperm.xlu1 %591, %v278_v58  }
  0xcb   : > { %384 = vperm.xlu1 %591, %v380_v60  }
 0x138   : > { %v247_v61 = vpop.xlane.xlu0 %246 }
 0x139   : > { %v253_v62 = vmul.f32 0.00390625, %v247_v61 }
 0x13b   : > { %v255_v63 = vadd.f32 1e-05, %v253_v62  ;;  %v252_v3 = vpop.xlane.xlu1 %251 }
 0x13c   : > { %v254_v5 = vmul.f32 0.00390625, %v252_v3  ;;  %v350_v8 = vpop.xlane.xlu0 %349 }
 0x13d   : > { %592 = vrsqrt.f32 %v255_v63  ;;  %v356_v11 = vmul.f32 0.00390625, %v350_v8 }
 0x13e   : > { %v256_v12 = vadd.f32 1e-05, %v254_v5 }
 0x13f   : > { %v358_v13 = vadd.f32 1e-05, %v356_v11  ;;  %v355_v14 = vpop.xlane.xlu1 %354 }
 0x140   : > { %594 = vrsqrt.f32 %v256_v12  ;;  %v357_v15 = vmul.f32 0.00390625, %v355_v14 }
 0x141   : > { %596 = vrsqrt.f32 %v358_v13 }
 0x142   : > { %v359_v16 = vadd.f32 1e-05, %v357_v15 }
 0x143   : > { %v282_v42 = vpop.permute.xlu1 %281 }
 0x144   : > { %598 = vrsqrt.f32 %v359_v16 }
 0x147   : > { %v593_v18 = vpop.eup %592  ;;  %v287_v43 = vpop.permute.xlu1 %286 }
 0x148   : > { %v259_v19 = vmul.f32 %v593_v18, %v210_v17 }
 0x14a   : > { %v595_v23 = vpop.eup %594  ;;  %263 = vperm.xlu0 %590, %v259_v19  }
 0x14b   : > { %v597_v26 = vpop.eup %596  ;;  %v260_v29 = vmul.f32 %v595_v23, %v211_v27  ;;  %v385_v44 = vpop.permute.xlu1 %384 }
 0x14c   : > { %v362_v28 = vmul.f32 %v597_v26, %v212_v22 }
 0x14e   : > { %366 = vperm.xlu1 %591, %v362_v28   ;;  %v599_v33 = vpop.eup %598 }
 0x14f   : > { %v363_v38 = vmul.f32 %v599_v33, %v213_v34 }
 0x152   : > { %268 = vperm.xlu1 %591, %v260_v29  }
 0x156   : > { %371 = vperm.xlu1 %591, %v363_v38  }
 0x15a   : > { %389 = vperm.xlu1 %591, %v381_v41  }
 0x1c9   : > { %v264_v45 = vpop.permute.xlu0 %263 }
 0x1ca   : > { %v271_v46 = vmul.f32 %v264_v45, %v727_v20  ;;  %v272_v47 = vmul.f32 %v264_v45, %v730_v21 }
 0x1cc   : > { %v289_v48 = vadd.f32 %v282_v42, %v271_v46  ;;  %v290_v49 = vadd.f32 %v282_v42, %v272_v47 }
 0x1cd   : > { %v367_v50 = vpop.permute.xlu1 %366 }
 0x1ce   : > { %v549_v51 = vmul.f32 -1.442695, %v289_v48  ;;  %v550_v32 = vmul.f32 -1.442695, %v290_v49  ;;  %v374_v52 = vmul.f32 %v367_v50, %v743_v30  ;;  %v375_v53 = vmul.f32 %v367_v50, %v746_v31 }
 0x1d0   : > { %600 = vpow2.f32 %v549_v51  ;;  %v392_v54 = vadd.f32 %v385_v44, %v374_v52  ;;  %v393_v55 = vadd.f32 %v385_v44, %v375_v53 }
 0x1d1   : > { %602 = vpow2.f32 %v550_v32  ;;  %v269_v56 = vpop.permute.xlu1 %268 }
 0x1d2   : > { %v557_v57 = vmul.f32 -1.442695, %v392_v54  ;;  %v558_v58 = vmul.f32 -1.442695, %v393_v55  ;;  %v273_v20 = vmul.f32 %v269_v56, %v733_v24  ;;  %v274_v21 = vmul.f32 %v269_v56, %v736_v25 }
 0x1d4   : > { %604 = vpow2.f32 %v557_v57  ;;  %v291_v59 = vadd.f32 %v287_v43, %v273_v20  ;;  %v292_v60 = vadd.f32 %v287_v43, %v274_v21 }
 0x1d5   : > { %606 = vpow2.f32 %v558_v58  ;;  %v372_v61 = vpop.permute.xlu1 %371 }
 0x1d6   : > { %v551_v62 = vmul.f32 -1.442695, %v291_v59  ;;  %v552_v30 = vmul.f32 -1.442695, %v292_v60  ;;  %v376_v31 = vmul.f32 %v372_v61, %v756_v36  ;;  %v377_v63 = vmul.f32 %v372_v61, %v760_v37 }
 0x1d8   : > { %608 = vpow2.f32 %v551_v62 }
 0x1d9   : > { %610 = vpow2.f32 %v552_v30  ;;  %v390_v3 = vpop.permute.xlu1 %389 }
 0x1da   : > { %v601_v5 = vpop.eup %600  ;;  %v394_v8 = vadd.f32 %v390_v3, %v376_v31  ;;  %v395_v11 = vadd.f32 %v390_v3, %v377_v63 }
 0x1db   : > { %v603_v24 = vpop.eup %602  ;;  %v305_v12 = vadd.f32 1.0, %v601_v5 }
 0x1dc   : > { %v306_v25 = vadd.f32 1.0, %v603_v24  ;;  %v559_v13 = vmul.f32 -1.442695, %v394_v8  ;;  %v560_v14 = vmul.f32 -1.442695, %v395_v11 }
 0x1dd   : > { %612 = vrcp.f32 %v305_v12 }
 0x1de   : > { %v605_v15 = vpop.eup %604  ;;  %614 = vrcp.f32 %v306_v25 }
 0x1df   : > { %v607_v16 = vpop.eup %606  ;;  %v408_v17 = vadd.f32 1.0, %v605_v15  ;;  %616 = vpow2.f32 %v559_v13 }
 0x1e0   : > { %v409_v36 = vadd.f32 1.0, %v607_v16  ;;  %618 = vpow2.f32 %v560_v14 }
 0x1e1   : > { %620 = vrcp.f32 %v408_v17 }
 0x1e2   : > { %v609_v37 = vpop.eup %608  ;;  %622 = vrcp.f32 %v409_v36 }
 0x1e3   : > { %v611_v18 = vpop.eup %610  ;;  %v307_v19 = vadd.f32 1.0, %v609_v37 }
 0x1e4   : > { %v308_v22 = vadd.f32 1.0, %v611_v18 }
 0x1e5   : > { %624 = vrcp.f32 %v307_v19 }
 0x1e6   : > { %626 = vrcp.f32 %v308_v22 }
 0x1e7   : > { %v613_v23 = vpop.eup %612 }
 0x1e8   : > { %v615_v26 = vpop.eup %614  ;;  %v317_v27 = vmul.f32 %v613_v23, %v698_v0 }
 0x1e9   : > { %v617_v28 = vpop.eup %616  ;;  %v318_v29 = vmul.f32 %v615_v26, %v700_v1 }
 0x1ea   : > { %v619_v33 = vpop.eup %618  ;;  %321 = vst [vmem:[%s208_s20] sm:$0xff] %v317_v27  ;;  %v410_v34 = vadd.f32 1.0, %v617_v28 }
 0x1eb   : > { %v621_v35 = vpop.eup %620  ;;  %322 = vst [vmem:[%s208_s20 + $0x8] sm:$0xff] %v318_v29  ;;  %v411_v38 = vadd.f32 1.0, %v619_v33 }
 0x1ec   : > { %v623_v39 = vpop.eup %622  ;;  %v420_v40 = vmul.f32 %v621_v35, %v710_v6  ;;  %628 = vrcp.f32 %v410_v34 }
 0x1ed   : > { %v421_v41 = vmul.f32 %v623_v39, %v712_v7  ;;  %630 = vrcp.f32 %v411_v38 }
 0x1ee   : > { %424 = vst [vmem:[%s208_s20 + $0x10] sm:$0xff] %v420_v40 }
 0x1ef   : > { %v625_v42 = vpop.eup %624  ;;  %425 = vst [vmem:[%s208_s20 + $0x18] sm:$0xff] %v421_v41 }
 0x1f0   : > { %v627_v0 = vpop.eup %626  ;;  %v319_v43 = vmul.f32 %v625_v42, %v702_v2 }
 0x1f1   : > { %v320_v1 = vmul.f32 %v627_v0, %v706_v4 }
 0x1f2   : > { %323 = vst [vmem:[%s208_s20 + $0x20] sm:$0xf] %v319_v43 }
 0x1f3   : > { %324 = vst [vmem:[%s208_s20 + $0x28] sm:$0xf] %v320_v1 }
 0x1f6   : > { %v629_v44 = vpop.eup %628 }
 0x1f7   : > { %v631_v45 = vpop.eup %630  ;;  %v422_v46 = vmul.f32 %v629_v44, %v716_v9 }
 0x1f8   : > { %v423_v6 = vmul.f32 %v631_v45, %v718_v10 }
 0x1f9   : > { %426 = vst [vmem:[%s208_s20 + $0x30] sm:$0xf] %v422_v46 }
 0x1fa   : > { %427 = vst [vmem:[%s208_s20 + $0x38] sm:$0xf] %v423_v6 }
 0x1fb PF: > { %s12_s11 = sadd.s32 1, %s654_s11   ;;  %s844_s9 = smov %s650_s10 }
 0x1fc   : > { %p9_p5 = scmp.ge.s32.totalorder %s12_s11, 4   ;;  %s845_s10 = smov %s847_s12 }
 0x1fe   :  { %11 = sbr.rel (!%p9_p5) target bundleno = 2 (0x2), region = 62 }

</bundles_post_ra>
